<compile_context>
chip_gen: v5e
topology: v5e:2x2
jax: 0.10.0
libtpu: 0.0.40
codegen_flags: <defaults>
</compile_context>

<pallas_src>
import functools

import jax
import jax.numpy as jnp
from jax.experimental import pallas as pl
from jax.experimental.pallas import tpu as pltpu


# ----------------------------- hardware query --------------------------------


@functools.lru_cache(maxsize=None)
def _vmem_capacity_bytes():
    try:
        info = pltpu.get_tpu_info()
        return int(getattr(info, "vmem_capacity_bytes", 64 * 1024 * 1024))
    except Exception:
        return 64 * 1024 * 1024  # conservative: v7x per-TensorCore VMEM


def _vmem_limit_bytes():
    # Explicit scoped-VMEM limit with headroom (v5e default scoped limit is
    # only 16 MiB; v7x physical VMEM is 64 MiB per TensorCore).
    return int(min(_vmem_capacity_bytes() // 2, 64 * 1024 * 1024))


# ----------------------------- kernel -----------------------------------------


def _make_fused_collate_kernel(num_samples, tile_l):
    """Fused gather (torch.stack) + per-channel normalize.

    Grid: (B, n_lane_tiles).  Each step DMAs one lane tile of sample b
    straight from its own HBM buffer into VMEM scratch (no stacked temp),
    applies y = x * scale + bias on the VPU, and stores the lane-dense block.
    Steps are fully self-contained -> safe under megacore sharding.
    """

    def kernel(scale_ref, bias_ref, *rest):
        x_hbm = rest[:num_samples]          # per-sample (C, L) HBM refs
        o_ref = rest[num_samples]           # (C, tile_l) output block
        buf = rest[num_samples + 1]         # (C, tile_l) VMEM scratch
        sem = rest[num_samples + 2]         # DMA semaphore

        b = pl.program_id(0)
        j = pl.program_id(1)
        start = pl.multiple_of(j * tile_l, 128)

        # Gather: copy the b-th sample's lane tile HBM -> VMEM.
        for bb in range(num_samples):
            @pl.when(b == bb)
            def _(bb=bb):
                pltpu.make_async_copy(
                    x_hbm[bb].at[:, pl.ds(start, tile_l)], buf, sem
                ).start()

        # Shape-matched descriptor just to wait on the semaphore.
        pltpu.make_async_copy(
            x_hbm[0].at[:, pl.ds(0, tile_l)], buf, sem
        ).wait()

        x = buf[...].astype(jnp.float32)
        y = x * scale_ref[...] + bias_ref[...]        # single fused madd
        o_ref[...] = y.astype(o_ref.dtype)

    return kernel


# ----------------------------- wrappers ----------------------------------------


def _out_dtype(dtype):
    return dtype if jnp.issubdtype(dtype, jnp.floating) else jnp.float32


def _choose_lane_tile(L, bytes_per_lane, budget_bytes, force_multi):
    """Largest multiple-of-128 divisor of L whose blocks fit the VMEM budget.

    Divisor choice avoids partial (masked) tail tiles; falls back to the full
    lane extent (always a legal block dim) when L is not a multiple of 128.
    """
    max_lanes = max(128, budget_bytes // max(1, bytes_per_lane))
    if force_multi and L % 128 == 0 and L >= 256:
        max_lanes = min(max_lanes, L // 2)   # guarantee >=2 grid steps (v7x)
    best = None
    if L % 128 == 0:
        t = 128
        while t <= L:
            if L % t == 0 and t <= max_lanes:
                best = t
            t += 128
    return best if best is not None else L


@jax.jit
def _fused_collate_images(samples, mean, std):
    """samples: tuple of per-sample (C, H, W); returns normalized (B, C, H, W)."""
    B = len(samples)
    C, H, W = samples[0].shape
    L = H * W
    in_dtype = samples[0].dtype
    out_dtype = _out_dtype(in_dtype)
    in_b = jnp.dtype(in_dtype).itemsize
    out_b = jnp.dtype(out_dtype).itemsize

    # Fold (x - mean) / std into a single multiply-add: y = x * scale + bias.
    mean_c = jnp.broadcast_to(jnp.asarray(mean, jnp.float32).reshape(-1), (C,))
    std_c = jnp.broadcast_to(jnp.asarray(std, jnp.float32).reshape(-1), (C,))
    inv_std = (1.0 / std_c).reshape(C, 1)
    scale = inv_std
    bias = (-mean_c.reshape(C, 1)) * inv_std

    # Generation-aware tiling: input tile is a single-buffered VMEM scratch,
    # output tile is double-buffered by the Pallas pipeline (count both, and
    # the f32-promoted output itemsize for integer inputs).
    vmem_limit = _vmem_limit_bytes()
    data_budget = int(vmem_limit * 0.6)
    bytes_per_lane = C * (in_b + 2 * out_b)
    tile_l = _choose_lane_tile(L, bytes_per_lane, data_budget,
                               force_multi=(B == 1))
    n_l = pl.cdiv(L, tile_l)

    # Lane-dense per-sample HBM views (reshape is free under jit).
    flat = tuple(s.reshape(C, L) for s in samples)

    prm_spec = pl.BlockSpec((C, 1), lambda b, j: (0, 0))       # resident
    out_spec = pl.BlockSpec((None, C, tile_l), lambda b, j: (b, 0, j))

    out = pl.pallas_call(
        _make_fused_collate_kernel(B, tile_l),
        out_shape=jax.ShapeDtypeStruct((B, C, L), out_dtype),
        grid=(B, n_l),
        in_specs=[prm_spec, prm_spec]
                 + [pl.BlockSpec(memory_space=pl.ANY)] * B,
        out_specs=out_spec,
        scratch_shapes=[pltpu.VMEM((C, tile_l), in_dtype),
                        pltpu.SemaphoreType.DMA],
        compiler_params=pltpu.CompilerParams(
            dimension_semantics=("parallel", "parallel"),
            vmem_limit_bytes=vmem_limit),
    )(scale, bias, *flat)
    return out.reshape(B, C, H, W)


@jax.jit
def _fused_collate_activity(samples, mean, std):
    """Stack + normalize the tiny (B, D) activity tensor in one XLA fusion.

    A dedicated pallas_call here would be pure launch/DMA overhead (the data
    is about one padded vreg), per the performance review.
    """
    acts = jnp.stack(samples)
    D = acts.shape[-1]
    mean_d = jnp.broadcast_to(jnp.asarray(mean, jnp.float32).reshape(-1), (D,))
    std_d = jnp.broadcast_to(jnp.asarray(std, jnp.float32).reshape(-1), (D,))
    out = (acts.astype(jnp.float32) - mean_d.reshape(1, D)) / std_d.reshape(1, D)
    return out.astype(_out_dtype(acts.dtype))


@jax.jit
def _stack_only(samples):
    return jnp.stack(samples)


class Collate:
    """JAX/Pallas port of boldgpt.data.Collate.

    image_transform / activity_transform: None or (mean, std) tuples standing
    in for the original (arbitrary) per-sample nn.Module transforms.
    """

    def __init__(self, image_transform=None, activity_transform=None):
        self.image_transform = image_transform
        self.activity_transform = activity_transform

    def __call__(self, batch):
        # defaultdict-gather + torch.stack equivalent (assumes every sample
        # carries the same keys, as in the original dataset).
        collated = {}
        keys = list(batch[0].keys())
        for k in keys:
            samples = tuple(sample[k] for sample in batch)
            if k == "image" and self.image_transform is not None:
                mean, std = self.image_transform
                _vmem_limit_bytes()   # warm the HW-info cache outside tracing
                collated[k] = _fused_collate_images(
                    samples,
                    jnp.asarray(mean, jnp.float32),
                    jnp.asarray(std, jnp.float32))
            elif k == "activity" and self.activity_transform is not None:
                mean, std = self.activity_transform
                collated[k] = _fused_collate_activity(
                    samples,
                    jnp.asarray(mean, jnp.float32),
                    jnp.asarray(std, jnp.float32))
            else:
                # TODO(synk): arbitrary nn.Module transforms / generic keys are
                # stacked in plain JAX; there is no per-key compute to fuse.
                collated[k] = _stack_only(samples)
        return collated


# ----------------------------- demo / check -----------------------------------


if __name__ == "__main__":
    B, C, H, W, D = 2, 4, 16, 16, 8

    key = jax.random.PRNGKey(0)
    k_img, k_act = jax.random.split(key)
    images = jax.random.normal(k_img, (B, C, H, W), jnp.float32)
    acts = jax.random.normal(k_act, (B, D), jnp.float32)

    # Deterministic "transform" parameters (stand-ins for the nn.Module args).
    img_mean = jnp.linspace(0.1, 0.4, C, dtype=jnp.float32)
    img_std = jnp.linspace(0.5, 1.25, C, dtype=jnp.float32)
    act_mean = jnp.linspace(-0.5, 0.5, D, dtype=jnp.float32)
    act_std = jnp.full((D,), 2.0, jnp.float32)

    batch = [
        {
            "image": images[b],      # per-sample CHW, as in the dataset
            "activity": acts[b],     # per-sample (D,)
            "index": jnp.int32(b),   # extra key with no transform
        }
        for b in range(B)
    ]

    collate = Collate(
        image_transform=(img_mean, img_std),
        activity_transform=(act_mean, act_std),
    )
    out = collate(batch)
    jax.block_until_ready(out)

    # Reference check against plain-JAX collate semantics.
    ref_img = (images - img_mean.reshape(1, C, 1, 1)) / img_std.reshape(1, C, 1, 1)
    ref_act = (acts - act_mean.reshape(1, D)) / act_std.reshape(1, D)
    assert out["image"].shape == (B, C, H, W)
    assert out["image"].dtype == images.dtype
    assert out["activity"].shape == (B, D)
    assert out["index"].shape == (B,)
    assert jnp.allclose(out["image"], ref_img, atol=1e-5, rtol=1e-5)
    assert jnp.allclose(out["activity"], ref_act, atol=1e-5, rtol=1e-5)
    assert jnp.array_equal(out["index"], jnp.arange(B, dtype=jnp.int32))

    # Also exercise the no-transform (pure stack) path.
    out_plain = Collate()(batch)
    jax.block_until_ready(out_plain)
    assert jnp.array_equal(out_plain["image"], images)
    assert jnp.array_equal(out_plain["activity"], acts)

    print("KERNEL_OK")
</pallas_src>

<mosaic_0001>
module attributes {stable_mosaic.version = 11 : i64} {
  func.func @kernel(%arg0: i32, %arg1: i32, %arg2: memref<4x1xf32, #tpu.memory_space<vmem>>, %arg3: memref<4x1xf32, #tpu.memory_space<vmem>>, %arg4: memref<4x256xf32, #tpu.memory_space<any>>, %arg5: memref<4x256xf32, #tpu.memory_space<any>>, %arg6: memref<1x4x256xf32, #tpu.memory_space<vmem>>, %arg7: memref<4x256xf32, #tpu.memory_space<vmem>>, %arg8: memref<!tpu.dma_semaphore, #tpu.memory_space<semaphore_mem>>) attributes {dimension_semantics = [#tpu.dimension_semantics<parallel>, #tpu.dimension_semantics<parallel>], iteration_bounds = array<i64: 2, 1>, scalar_prefetch = 0 : i64, scratch_operands = 2 : i64, tpu.core_type = #tpu.core_type<tc>, window_params = [{pipeline_mode = #tpu.pipeline_mode<synchronous>, transform_indices = @transform_0, window_bounds = array<i64: 4, 1>}, {pipeline_mode = #tpu.pipeline_mode<synchronous>, transform_indices = @transform_1, window_bounds = array<i64: 4, 1>}, {}, {}, {transform_indices = @transform_4, window_bounds = array<i64: 1, 4, 256>}]} {
    %c256_i32 = arith.constant 256 : i32
    %0 = arith.muli %arg1, %c256_i32 : i32
    %1 = tpu.assume_multiple %0, 128 : i32
    %c0_i32 = arith.constant 0 : i32
    %2 = arith.cmpi eq, %arg0, %c0_i32 : i32
    %3 = arith.extui %2 : i1 to i32
    %c0_i32_0 = arith.constant 0 : i32
    %4 = arith.cmpi ne, %3, %c0_i32_0 : i32
    scf.if %4 {
      %c0_i32_12 = arith.constant 0 : i32
      %19 = tpu.memref_slice %arg4[%c0_i32_12, %1] : memref<4x256xf32, #tpu.memory_space<any>> -> memref<4x256xf32, #tpu.memory_space<any>>
      tpu.enqueue_dma source(%19 : memref<4x256xf32, #tpu.memory_space<any>>) target(%arg7 : memref<4x256xf32, #tpu.memory_space<vmem>>) target_semaphore(%arg8 : memref<!tpu.dma_semaphore, #tpu.memory_space<semaphore_mem>>)
    } else {
    }
    %c1_i32 = arith.constant 1 : i32
    %5 = arith.cmpi eq, %arg0, %c1_i32 : i32
    %6 = arith.extui %5 : i1 to i32
    %c0_i32_1 = arith.constant 0 : i32
    %7 = arith.cmpi ne, %6, %c0_i32_1 : i32
    scf.if %7 {
      %c0_i32_12 = arith.constant 0 : i32
      %19 = tpu.memref_slice %arg5[%c0_i32_12, %1] : memref<4x256xf32, #tpu.memory_space<any>> -> memref<4x256xf32, #tpu.memory_space<any>>
      tpu.enqueue_dma source(%19 : memref<4x256xf32, #tpu.memory_space<any>>) target(%arg7 : memref<4x256xf32, #tpu.memory_space<vmem>>) target_semaphore(%arg8 : memref<!tpu.dma_semaphore, #tpu.memory_space<semaphore_mem>>)
    } else {
    }
    %c0_i32_2 = arith.constant 0 : i32
    %c0_i32_3 = arith.constant 0 : i32
    %8 = tpu.memref_slice %arg4[%c0_i32_2, %c0_i32_3] : memref<4x256xf32, #tpu.memory_space<any>> -> memref<4x256xf32, #tpu.memory_space<any>>
    tpu.wait_dma2 semaphore(%arg8 : memref<!tpu.dma_semaphore, #tpu.memory_space<semaphore_mem>>) src(%8 : memref<4x256xf32, #tpu.memory_space<any>>) dst(%arg7 : memref<4x256xf32, #tpu.memory_space<vmem>>)
    %c0 = arith.constant 0 : index
    %c0_4 = arith.constant 0 : index
    %9 = vector.load %arg7[%c0, %c0_4] : memref<4x256xf32, #tpu.memory_space<vmem>>, vector<4x256xf32>
    %c0_5 = arith.constant 0 : index
    %c0_6 = arith.constant 0 : index
    %10 = vector.load %arg2[%c0_5, %c0_6] : memref<4x1xf32, #tpu.memory_space<vmem>>, vector<4x1xf32>
    %11 = vector.broadcast %10 : vector<4x1xf32> to vector<4x256xf32>
    %12 = arith.mulf %9, %11 : vector<4x256xf32>
    %c0_7 = arith.constant 0 : index
    %c0_8 = arith.constant 0 : index
    %13 = vector.load %arg3[%c0_7, %c0_8] : memref<4x1xf32, #tpu.memory_space<vmem>>, vector<4x1xf32>
    %14 = vector.broadcast %13 : vector<4x1xf32> to vector<4x256xf32>
    %15 = arith.addf %12, %14 : vector<4x256xf32>
    %c0_9 = arith.constant 0 : index
    %c0_10 = arith.constant 0 : index
    %c0_11 = arith.constant 0 : index
    %16 = vector.load %arg6[%c0_9, %c0_10, %c0_11] : memref<1x4x256xf32, #tpu.memory_space<vmem>>, vector<1x4x256xf32>
    %17 = vector.shape_cast %16 : vector<1x4x256xf32> to vector<4x256xf32>
    %18 = vector.shape_cast %15 : vector<4x256xf32> to vector<1x4x256xf32>
    tpu.vector_store %arg6[%c0_9, %c0_10, %c0_11], %18 {strides = array<i32>} : memref<1x4x256xf32, #tpu.memory_space<vmem>>, vector<1x4x256xf32>,
    return
  }
  func.func @transform_0(%arg0: i32, %arg1: i32) -> (i32, i32) {
    %c0_i32 = arith.constant 0 : i32
    %c0_i32_0 = arith.constant 0 : i32
    %c0_i32_1 = arith.constant 0 : i32
    return %c0_i32, %c0_i32_0 : i32, i32
  }
  func.func @transform_1(%arg0: i32, %arg1: i32) -> (i32, i32) {
    %c0_i32 = arith.constant 0 : i32
    %c0_i32_0 = arith.constant 0 : i32
    %c0_i32_1 = arith.constant 0 : i32
    return %c0_i32, %c0_i32_0 : i32, i32
  }
  func.func @transform_4(%arg0: i32, %arg1: i32) -> (i32, i32, i32) {
    %c0_i32 = arith.constant 0 : i32
    %c0_i32_0 = arith.constant 0 : i32
    return %arg0, %c0_i32, %arg1 : i32, i32, i32
  }
}

</mosaic_0001>

<bundles_post_ra>
// kernel: mul.1
= control target key start
LH: loop header
LB: loop body
LE: loop exit
PB: predicated region body
PF: predicated region fallthrough
CT: control target
= control target key end

     0   :  { %s34_s0 = inlined_call_operand.vmem [shape: f32[4,1], index: 0, kind: input, shape index: {}]   ;;  %s35_s1 = inlined_call_operand.vmem [shape: f32[4,1], index: 1, kind: input, shape index: {}]   ;;  %s36_s2 = inlined_call_operand.vmem [shape: f32[4,1], index: 2, kind: output, shape index: {}]  }
   0x1   :  { %v3_v0 = vld [vmem:[%s34_s0] sm:$0xf] }
   0x2   :  { %v4_v1 = vld [vmem:[%s35_s1] sm:$0xf] }
   0x3   :  { %v7_v2 = vmul.f32 %v4_v1, %v3_v0 }
   0x5   :  { %9 = vst [vmem:[%s36_s2] sm:$0xf] %v7_v2 }

// kernel: _fused_collate_images.1
= control target key start
LH: loop header
LB: loop body
LE: loop exit
PB: predicated region body
PF: predicated region fallthrough
CT: control target
= control target key end

     0   :  { %s441_s15 = smov 0   ;;  %s443_s16 = smov 0   ;;  %s486_s0 = inlined_call_operand.vmem [shape: f32[4,1], index: 0, kind: input, shape index: {}]   ;;  %s487_s1 = inlined_call_operand.vmem [shape: f32[4,1], index: 1, kind: input, shape index: {}]   ;;  %s488_s2 = inlined_call_operand.vmem [shape: f32[4,256], index: 2, kind: input, shape index: {}]   ;;  %s489_s3 = inlined_call_operand.vmem [shape: f32[4,256], index: 3, kind: input, shape index: {}]   ;;  %s490_s4 = inlined_call_operand.vmem [shape: f32[2,4,256], index: 4, kind: output, shape index: {}]  }
   0x1   :  { %s445_s17 = smov 0  }
   0x2 LB: > { %s26_s18 = sadd.s32 1, %s408_s16  ;;  %p352_p0 = scmp.ge.s32.totalorder %s412_s17, 1  ;;  %s412_s17 = sphi %s445_s17, %s14_s17   ;;  %s408_s16 = sphi %s443_s16, %s492_s16   ;;  %s404_s15 = sphi %s441_s15, %s491_s15  }
   0x3   : > { %p28_p1 = scmp.ge.s32.totalorder %s26_s18, 2  ;;  %p118_p2 = scmp.lt.s32.totalorder %s412_s17, 3 }
   0x5   : > { %s494_s18 = smov (%p28_p1, %s26_s18), 0  ;;  %p119_p3 = pnand %p352_p0, %p118_p2 }
   0x6   : > { %p140_p4 = scmp.lt.s32.totalorder (!%p119_p3), %s404_s15, 1  ;;  %p355_p5 = scmp.ne.s32.totalorder (!%p119_p3), %s404_s15, 0 }
   0x7   : > { %122 = sbr.rel (%p119_p3) target bundleno = 162 (0xa2), region = 28 }
   0xc   : > { %s141_s19 = scalar_select %p140_p4, %s404_s15, 1 }
   0xd   : > { %153 = sbr.rel (%p355_p5) target bundleno = 21 (0x15), region = 32 }
   0xe   : > { %s360_s20 = sshll.u32 %s141_s19, 3 }
   0xf   : > { %s462_s23 = scalar_lea.vmem %s490_s4, %s360_s20 }
  0x12   : > { %v184_v0 = vld [vmem:[%s488_s2] sm:$0xff] }
  0x13   : > { %185 = vst [vmem:[#allocation2] sm:$0xff] %v184_v0 }
  0x14   : > { %191 = vsyncadd [#allocation3], 128 }
  0x15 PF: > { %p356_p6 = scmp.ne.s32.totalorder %s404_s15, 1 }
  0x17   : > { %195 = sbr.rel (%p356_p6) target bundleno = 31 (0x1f), region = 70 }
  0x1c   : > { %v226_v1 = vld [vmem:[%s489_s3] sm:$0xff] }
  0x1d   : > { %227 = vst [vmem:[#allocation2] sm:$0xff] %v226_v1 }
  0x1e   : > { %233 = vsyncadd [#allocation3], 128 }
  0x1f PF: > { %400 = dma.done.wait [#allocation3], 128 }
  0x20   : > { %401 = vsyncadd [#allocation3], 4294967168  ;;  %v414_v2 = vmov 0   ;;  %v239_v3 = vld [vmem:[%s486_s0] sm:$0xf] }
  0x21   : > { %387 = vset.pattern.permute.xlu0 %v414_v2  ;;  %v250_v4 = vld [vmem:[%s487_s1] sm:$0xf]  ;;  %v415_v5 = vmov 839922192  }
  0x22   : > { %242 = vperm.xlu0 %387, %v239_v3   ;;  %v245_v6 = vunpack.c.l.s4 %v415_v5 }
  0x24   : > { %v246_v8 = vunpack.c.0.s8 %v245_v6  ;;  %v238_v10 = vld [vmem:[#allocation2] sm:$0xff] }
  0x2a   : > { %253 = vperm.xlu0 %387, %v250_v4  }
  0x94   : > { %v243_v7 = vpop.permute.xlu0 %242 }
  0x95   : > { %v247_v9 = vperm.slane %v243_v7, %v246_v8 }
  0x97   : > { %v249_v12 = vmul.f32 %v247_v9, %v238_v10 }
  0x9c   : > { %v254_v11 = vpop.permute.xlu0 %253 }
  0x9d   : > { %v258_v13 = vperm.slane %v254_v11, %v246_v8 }
  0x9f   : > { %v260_v14 = vadd.f32 %v258_v13, %v249_v12 }
  0xa1   : > { %261 = vst [vmem:[%s462_s23] sm:$0xff] %v260_v14 }
  0xa2 PF: > { %s14_s17 = sadd.s32 1, %s412_s17   ;;  %s491_s15 = smov %s408_s16 }
  0xa3   : > { %p11_p7 = scmp.ge.s32.totalorder %s14_s17, 4   ;;  %s492_s16 = smov %s494_s18 }
  0xa5   :  { %13 = sbr.rel (!%p11_p7) target bundleno = 2 (0x2), region = 141 }
  0xaa   :  { %292 = vsyncmov [#allocation3] }
  0xad   :  { %s293_s6 = vpop.sfrf %292 }
  0xae   :  { %p359_p8 = scmp.ne.s32.totalorder %s293_s6, 0 }
  0xb0   :  { %297 = shalt.err (%p359_p8)  }

</bundles_post_ra>
